<compile_context>
chip_gen: v7x
topology: tpu7x:2x2x1
jax: 0.10.0
libtpu: 0.0.40
codegen_flags: <defaults>
</compile_context>

<pallas_src>
import jax
import jax.numpy as jnp
import numpy as np
from jax import lax
from jax.experimental import pallas as pl
from jax.experimental.pallas import tpu as pltpu


def _sa_kernel(x_ref, wq_ref, bq_ref, wk_ref, wv_ref, bv_ref,
               out_ref, att_ref, q_s, k_s, v_s):
    # Block shapes:
    #   x_ref   (1, C, N)   out_ref (1, C, TQ)   att_ref (1, TQ, N)
    #   q_s (N, Cq)  k_s (Cq, N)  v_s (C, N)   (compute dtype, VMEM scratch)
    qi = pl.program_id(1)
    tq = att_ref.shape[1]            # static query-tile size
    cdt = k_s.dtype                  # MXU input dtype (fp32 or bf16)

    # ---- Q/K/V projections: once per batch element, resident across tiles ----
    @pl.when(qi == 0)
    def _():
        x = x_ref[0].astype(cdt)                                        # (C, N)
        q_cn = jnp.dot(wq_ref[...], x,
                       preferred_element_type=jnp.float32) + bq_ref[...]  # (Cq, N) f32
        # store query position-major so the per-tile slice is a sublane slice
        # and the energy matmul is a canonical (TQ,Cq)@(Cq,N) MXU op.
        q_s[...] = jnp.transpose(q_cn).astype(cdt)                      # (N, Cq)
        # Key bias intentionally dropped (softmax row-shift invariance).
        k_s[...] = jnp.dot(wk_ref[...], x,
                           preferred_element_type=jnp.float32).astype(cdt)   # (Cq, N)
        v_s[...] = (jnp.dot(wv_ref[...], x,
                            preferred_element_type=jnp.float32)
                    + bv_ref[...]).astype(cdt)                          # (C, N)

    start = qi * tq
    if tq % 128 == 0:                # static check; aligned-offset hint
        start = pl.multiple_of(start, 128)
    q_tile = q_s[pl.ds(start, tq), :]                                   # (TQ, Cq)

    # energy[i, j] = sum_c q[c, qstart+i] * k[c, j]
    energy = jnp.dot(q_tile, k_s[...],
                     preferred_element_type=jnp.float32)                # (TQ, N)

    # Row softmax in fp32; divide -> reciprocal * multiply.
    m = jnp.max(energy, axis=-1, keepdims=True)
    e = jnp.exp(energy - m)
    inv = pl.reciprocal(jnp.sum(e, axis=-1, keepdims=True), approx=False)
    att = e * inv                                                       # (TQ, N)
    att_ref[0] = att.astype(att_ref.dtype)

    # out[c, i] = sum_j v[c, j] * att[i, j]   (== bmm(value, attention^T))
    out_ref[0] = lax.dot_general(v_s[...], att.astype(cdt),
                                 (((1,), (1,)), ((), ())),
                                 preferred_element_type=jnp.float32
                                 ).astype(out_ref.dtype)


def _choose_tq(n, target):
    """Largest query tile satisfying Pallas tiling rules: the full N, or a
    multiple of 128 that divides N."""
    if n <= target:
        return n
    t = (target // 128) * 128
    while t >= 128:
        if n % t == 0:
            return t
        t -= 128
    # TODO(synk): N has no 128-aligned divisor <= target; fall back to a single
    # full-N query tile (monolithic attention row block).
    return n


def _default_tq_target():
    """Per-generation query-tile target: v7x has only 64 MiB VMEM, so keep the
    tile smaller there; v5e/v6e (128 MiB) can afford a bigger one."""
    try:
        vmem = getattr(pltpu.get_tpu_info(), "vmem_capacity_bytes", None)
        if vmem is not None and vmem > 80 * 1024 * 1024:
            return 512
    except Exception:
        pass
    return 256


def spatial_self_attention(x_nchw, params, *, compute_dtype=jnp.bfloat16, tq=None):
    """x_nchw: (B, C, W, H) float32.  Returns (out (B,C,W,H), attention (B,N,N)).

    compute_dtype: dtype fed to the MXU matmuls (accumulation is always fp32).
      bf16 runs the MXU at native rate; pass jnp.float32 for exact parity with
      the fp32 reference.
    """
    B, C, W, H = x_nchw.shape
    N = W * H
    Cq = params["wq"].shape[0]

    if tq is None:
        tq = _choose_tq(N, _default_tq_target())
    assert N % tq == 0
    nq = N // tq

    # Channels-first: NCHW -> (B, C, N) is a pure reshape (no transpose).
    x_bcn = x_nchw.reshape(B, C, N)

    # Conv weights (Cout, Cin, 1, 1) -> (Cout, Cin); biases as column vectors
    # (lane-broadcast).  Weights carried in compute_dtype; biases stay fp32.
    wq = params["wq"][:, :, 0, 0].astype(compute_dtype)     # (Cq, C)
    wk = params["wk"][:, :, 0, 0].astype(compute_dtype)     # (Cq, C)
    wv = params["wv"][:, :, 0, 0].astype(compute_dtype)     # (C, C)
    bq = params["bq"].reshape(Cq, 1).astype(jnp.float32)
    bv = params["bv"].reshape(C, 1).astype(jnp.float32)
    # params["bk"] intentionally unused (see kernel comment).

    grid_spec = pltpu.PrefetchScalarGridSpec(
        num_scalar_prefetch=0,
        grid=(B, nq),                                        # query axis innermost
        in_specs=[
            pl.BlockSpec((1, C, N), lambda b, q: (b, 0, 0)),    # x (reused over q)
            pl.BlockSpec((Cq, C), lambda b, q: (0, 0)),         # wq
            pl.BlockSpec((Cq, 1), lambda b, q: (0, 0)),         # bq
            pl.BlockSpec((Cq, C), lambda b, q: (0, 0)),         # wk
            pl.BlockSpec((C, C), lambda b, q: (0, 0)),          # wv
            pl.BlockSpec((C, 1), lambda b, q: (0, 0)),          # bv
        ],
        out_specs=[
            pl.BlockSpec((1, C, tq), lambda b, q: (b, 0, q)),   # out (lane-dense)
            pl.BlockSpec((1, tq, N), lambda b, q: (b, q, 0)),   # attention
        ],
        scratch_shapes=[
            pltpu.VMEM((N, Cq), compute_dtype),                 # q (all positions)
            pltpu.VMEM((Cq, N), compute_dtype),                 # k (all positions)
            pltpu.VMEM((C, N), compute_dtype),                  # v (all positions)
        ],
    )

    cost = pl.CostEstimate(
        flops=int(B * (2 * N * C * (2 * Cq + C) + 2 * N * N * (Cq + C))),
        transcendentals=int(B * N * N),
        bytes_accessed=int(4 * B * (2 * N * C + N * N)),
    )

    out_bcn, att = pl.pallas_call(
        _sa_kernel,
        out_shape=(
            jax.ShapeDtypeStruct((B, C, N), jnp.float32),
            jax.ShapeDtypeStruct((B, N, N), jnp.float32),
        ),
        grid_spec=grid_spec,
        compiler_params=pltpu.CompilerParams(
            dimension_semantics=("parallel", "arbitrary"),
            # Above the 16/32 MiB scoped defaults, below v7x's 64 MiB physical.
            vmem_limit_bytes=48 * 1024 * 1024,
        ),
        cost_estimate=cost,
    )(x_bcn, wq, bq, wk, wv, bv)

    return out_bcn.reshape(B, C, W, H), att


def _reference(x, params):
    """Pure-JAX reference mirroring the PyTorch forward exactly."""
    B, C, W, H = x.shape
    N = W * H

    def conv1x1(x, w, b):
        return jnp.einsum("bchw,oc->bohw", x, w[:, :, 0, 0]) + b[None, :, None, None]

    proj_query = conv1x1(x, params["wq"], params["bq"]).reshape(B, -1, N).transpose(0, 2, 1)
    proj_key = conv1x1(x, params["wk"], params["bk"]).reshape(B, -1, N)
    energy = jnp.einsum("bnc,bcm->bnm", proj_query, proj_key)
    attention = jax.nn.softmax(energy, axis=-1)
    proj_value = conv1x1(x, params["wv"], params["bv"]).reshape(B, -1, N)
    out = jnp.einsum("bcj,bij->bci", proj_value, attention)
    return out.reshape(B, C, W, H), attention


if __name__ == "__main__":
    # Small shapes consistent with the module (in_dim >= 8 so Cq = C // 8 >= 1).
    B, C, W, H = 2, 16, 8, 8
    Cq = C // 8

    key = jax.random.PRNGKey(0)
    kx, kwq, kbq, kwk, kbk, kwv, kbv = jax.random.split(key, 7)

    x = jax.random.normal(kx, (B, C, W, H), dtype=jnp.float32)
    params = {
        "wq": 0.2 * jax.random.normal(kwq, (Cq, C, 1, 1), dtype=jnp.float32),
        "bq": 0.1 * jax.random.normal(kbq, (Cq,), dtype=jnp.float32),
        "wk": 0.2 * jax.random.normal(kwk, (Cq, C, 1, 1), dtype=jnp.float32),
        "bk": 0.1 * jax.random.normal(kbk, (Cq,), dtype=jnp.float32),
        "wv": 0.2 * jax.random.normal(kwv, (C, C, 1, 1), dtype=jnp.float32),
        "bv": 0.1 * jax.random.normal(kbv, (C,), dtype=jnp.float32),
    }

    # --- exact fp32 path: tight parity with the reference ---
    out32, att32 = spatial_self_attention(x, params, compute_dtype=jnp.float32)
    out32, att32 = jax.block_until_ready((out32, att32))
    out_ref, att_ref = _reference(x, params)
    np.testing.assert_allclose(np.asarray(out32), np.asarray(out_ref), rtol=1e-5, atol=1e-5)
    np.testing.assert_allclose(np.asarray(att32), np.asarray(att_ref), rtol=1e-5, atol=1e-5)

    # --- bf16-MXU path (default): validate against a bf16-rounded reference ---
    out16, att16 = spatial_self_attention(x, params)        # compute_dtype=bf16
    out16, att16 = jax.block_until_ready((out16, att16))
    x_bf = x.astype(jnp.bfloat16).astype(jnp.float32)
    params_bf = {k: (v.astype(jnp.bfloat16).astype(jnp.float32) if k.startswith("w") else v)
                 for k, v in params.items()}
    out_ref16, att_ref16 = _reference(x_bf, params_bf)
    np.testing.assert_allclose(np.asarray(out16), np.asarray(out_ref16), rtol=3e-2, atol=3e-2)
    np.testing.assert_allclose(np.asarray(att16), np.asarray(att_ref16), rtol=3e-2, atol=3e-2)

    print("KERNEL_OK")
</pallas_src>

<mosaic_0001>
module attributes {stable_mosaic.version = 11 : i64} {
  func.func @_sa_kernel(%arg0: i32, %arg1: i32, %arg2: memref<1x16x64xf32, #tpu.memory_space<vmem>>, %arg3: memref<2x16xf32, #tpu.memory_space<vmem>>, %arg4: memref<2x1xf32, #tpu.memory_space<vmem>>, %arg5: memref<2x16xf32, #tpu.memory_space<vmem>>, %arg6: memref<16x16xf32, #tpu.memory_space<vmem>>, %arg7: memref<16x1xf32, #tpu.memory_space<vmem>>, %arg8: memref<1x16x64xf32, #tpu.memory_space<vmem>>, %arg9: memref<1x64x64xf32, #tpu.memory_space<vmem>>, %arg10: memref<64x2xf32, #tpu.memory_space<vmem>>, %arg11: memref<2x64xf32, #tpu.memory_space<vmem>>, %arg12: memref<16x64xf32, #tpu.memory_space<vmem>>) attributes {dimension_semantics = [#tpu.dimension_semantics<parallel>, #tpu.dimension_semantics<arbitrary>], iteration_bounds = array<i64: 2, 1>, scalar_prefetch = 0 : i64, scratch_operands = 3 : i64, tpu.core_type = #tpu.core_type<tc>, window_params = [{transform_indices = @transform_0, window_bounds = array<i64: 1, 16, 64>}, {pipeline_mode = #tpu.pipeline_mode<synchronous>, transform_indices = @transform_1, window_bounds = array<i64: 2, 16>}, {pipeline_mode = #tpu.pipeline_mode<synchronous>, transform_indices = @transform_2, window_bounds = array<i64: 2, 1>}, {pipeline_mode = #tpu.pipeline_mode<synchronous>, transform_indices = @transform_3, window_bounds = array<i64: 2, 16>}, {pipeline_mode = #tpu.pipeline_mode<synchronous>, transform_indices = @transform_4, window_bounds = array<i64: 16, 16>}, {pipeline_mode = #tpu.pipeline_mode<synchronous>, transform_indices = @transform_5, window_bounds = array<i64: 16, 1>}, {transform_indices = @transform_6, window_bounds = array<i64: 1, 16, 64>}, {transform_indices = @transform_7, window_bounds = array<i64: 1, 64, 64>}]} {
    %c0_i32 = arith.constant 0 : i32
    %0 = arith.cmpi eq, %arg1, %c0_i32 : i32
    %1 = arith.extui %0 : i1 to i32
    %c0_i32_0 = arith.constant 0 : i32
    %2 = arith.cmpi ne, %1, %c0_i32_0 : i32
    scf.if %2 {
      %c0_14 = arith.constant 0 : index
      %c0_15 = arith.constant 0 : index
      %c0_16 = arith.constant 0 : index
      %26 = vector.load %arg2[%c0_14, %c0_15, %c0_16] : memref<1x16x64xf32, #tpu.memory_space<vmem>>, vector<1x16x64xf32>
      %27 = vector.shape_cast %26 : vector<1x16x64xf32> to vector<16x64xf32>
      %c0_17 = arith.constant 0 : index
      %c0_18 = arith.constant 0 : index
      %28 = vector.load %arg3[%c0_17, %c0_18] : memref<2x16xf32, #tpu.memory_space<vmem>>, vector<2x16xf32>
      %cst_19 = arith.constant dense<0.000000e+00> : vector<2x64xf32>
      %29 = tpu.matmul %28, %27, %cst_19 {dimension_numbers = #tpu.dot_dimension_numbers<[1], [0], [0], [1], [0, 0, 1, 1], [], []>} : vector<2x16xf32>, vector<16x64xf32>, vector<2x64xf32> -> vector<2x64xf32>
      %c0_20 = arith.constant 0 : index
      %c0_21 = arith.constant 0 : index
      %30 = vector.load %arg4[%c0_20, %c0_21] : memref<2x1xf32, #tpu.memory_space<vmem>>, vector<2x1xf32>
      %31 = vector.broadcast %30 : vector<2x1xf32> to vector<2x64xf32>
      %32 = arith.addf %29, %31 : vector<2x64xf32>
      %33 = tpu.transpose %32, [1, 0] : vector<2x64xf32> -> vector<64x2xf32>
      %c0_22 = arith.constant 0 : index
      %c0_23 = arith.constant 0 : index
      %34 = vector.load %arg10[%c0_22, %c0_23] : memref<64x2xf32, #tpu.memory_space<vmem>>, vector<64x2xf32>
      tpu.vector_store %arg10[%c0_22, %c0_23], %33 {strides = array<i32>} : memref<64x2xf32, #tpu.memory_space<vmem>>, vector<64x2xf32>,
      %c0_24 = arith.constant 0 : index
      %c0_25 = arith.constant 0 : index
      %35 = vector.load %arg5[%c0_24, %c0_25] : memref<2x16xf32, #tpu.memory_space<vmem>>, vector<2x16xf32>
      %cst_26 = arith.constant dense<0.000000e+00> : vector<2x64xf32>
      %36 = tpu.matmul %35, %27, %cst_26 {dimension_numbers = #tpu.dot_dimension_numbers<[1], [0], [0], [1], [0, 0, 1, 1], [], []>} : vector<2x16xf32>, vector<16x64xf32>, vector<2x64xf32> -> vector<2x64xf32>
      %c0_27 = arith.constant 0 : index
      %c0_28 = arith.constant 0 : index
      %37 = vector.load %arg11[%c0_27, %c0_28] : memref<2x64xf32, #tpu.memory_space<vmem>>, vector<2x64xf32>
      tpu.vector_store %arg11[%c0_27, %c0_28], %36 {strides = array<i32>} : memref<2x64xf32, #tpu.memory_space<vmem>>, vector<2x64xf32>,
      %c0_29 = arith.constant 0 : index
      %c0_30 = arith.constant 0 : index
      %38 = vector.load %arg6[%c0_29, %c0_30] : memref<16x16xf32, #tpu.memory_space<vmem>>, vector<16x16xf32>
      %cst_31 = arith.constant dense<0.000000e+00> : vector<16x64xf32>
      %39 = tpu.matmul %38, %27, %cst_31 {dimension_numbers = #tpu.dot_dimension_numbers<[1], [0], [0], [1], [0, 0, 1, 1], [], []>} : vector<16x16xf32>, vector<16x64xf32>, vector<16x64xf32> -> vector<16x64xf32>
      %c0_32 = arith.constant 0 : index
      %c0_33 = arith.constant 0 : index
      %40 = vector.load %arg7[%c0_32, %c0_33] : memref<16x1xf32, #tpu.memory_space<vmem>>, vector<16x1xf32>
      %41 = vector.broadcast %40 : vector<16x1xf32> to vector<16x64xf32>
      %42 = arith.addf %39, %41 : vector<16x64xf32>
      %c0_34 = arith.constant 0 : index
      %c0_35 = arith.constant 0 : index
      %43 = vector.load %arg12[%c0_34, %c0_35] : memref<16x64xf32, #tpu.memory_space<vmem>>, vector<16x64xf32>
      tpu.vector_store %arg12[%c0_34, %c0_35], %42 {strides = array<i32>} : memref<16x64xf32, #tpu.memory_space<vmem>>, vector<16x64xf32>,
    } else {
    }
    %c64_i32 = arith.constant 64 : i32
    %3 = arith.muli %arg1, %c64_i32 : i32
    %4 = arith.index_cast %3 : i32 to index
    %c0 = arith.constant 0 : index
    %5 = vector.load %arg10[%4, %c0] : memref<64x2xf32, #tpu.memory_space<vmem>>, vector<64x2xf32>
    %c0_1 = arith.constant 0 : index
    %c0_2 = arith.constant 0 : index
    %6 = vector.load %arg11[%c0_1, %c0_2] : memref<2x64xf32, #tpu.memory_space<vmem>>, vector<2x64xf32>
    %cst = arith.constant dense<0.000000e+00> : vector<64x64xf32>
    %7 = tpu.matmul %5, %6, %cst {dimension_numbers = #tpu.dot_dimension_numbers<[1], [0], [0], [1], [0, 0, 1, 1], [], []>} : vector<64x2xf32>, vector<2x64xf32>, vector<64x64xf32> -> vector<64x64xf32>
    %cst_3 = arith.constant dense<0xFF800000> : vector<64xf32>
    %8 = vector.multi_reduction <maximumf>, %7, %cst_3 [1] : vector<64x64xf32> to vector<64xf32>
    %9 = vector.shape_cast %8 : vector<64xf32> to vector<64x1xf32>
    %10 = vector.broadcast %9 : vector<64x1xf32> to vector<64x64xf32>
    %11 = arith.subf %7, %10 : vector<64x64xf32>
    %12 = math.exp %11 : vector<64x64xf32>
    %cst_4 = arith.constant dense<0.000000e+00> : vector<64xf32>
    %13 = vector.multi_reduction <add>, %12, %cst_4 [1] : vector<64x64xf32> to vector<64xf32>
    %14 = vector.shape_cast %13 : vector<64xf32> to vector<64x1xf32>
    %15 = tpu.reciprocal %14 : vector<64x1xf32> -> vector<64x1xf32>
    %16 = vector.broadcast %15 : vector<64x1xf32> to vector<64x64xf32>
    %17 = arith.mulf %12, %16 : vector<64x64xf32>
    %c0_5 = arith.constant 0 : index
    %c0_6 = arith.constant 0 : index
    %c0_7 = arith.constant 0 : index
    %18 = vector.load %arg9[%c0_5, %c0_6, %c0_7] : memref<1x64x64xf32, #tpu.memory_space<vmem>>, vector<1x64x64xf32>
    %19 = vector.shape_cast %18 : vector<1x64x64xf32> to vector<64x64xf32>
    %20 = vector.shape_cast %17 : vector<64x64xf32> to vector<1x64x64xf32>
    tpu.vector_store %arg9[%c0_5, %c0_6, %c0_7], %20 {strides = array<i32>} : memref<1x64x64xf32, #tpu.memory_space<vmem>>, vector<1x64x64xf32>,
    %c0_8 = arith.constant 0 : index
    %c0_9 = arith.constant 0 : index
    %21 = vector.load %arg12[%c0_8, %c0_9] : memref<16x64xf32, #tpu.memory_space<vmem>>, vector<16x64xf32>
    %cst_10 = arith.constant dense<0.000000e+00> : vector<16x64xf32>
    %22 = tpu.matmul %21, %17, %cst_10 {dimension_numbers = #tpu.dot_dimension_numbers<[1], [1], [0], [0], [0, 0, 1, 0], [], []>} : vector<16x64xf32>, vector<64x64xf32>, vector<16x64xf32> -> vector<16x64xf32>
    %c0_11 = arith.constant 0 : index
    %c0_12 = arith.constant 0 : index
    %c0_13 = arith.constant 0 : index
    %23 = vector.load %arg8[%c0_11, %c0_12, %c0_13] : memref<1x16x64xf32, #tpu.memory_space<vmem>>, vector<1x16x64xf32>
    %24 = vector.shape_cast %23 : vector<1x16x64xf32> to vector<16x64xf32>
    %25 = vector.shape_cast %22 : vector<16x64xf32> to vector<1x16x64xf32>
    tpu.vector_store %arg8[%c0_11, %c0_12, %c0_13], %25 {strides = array<i32>} : memref<1x16x64xf32, #tpu.memory_space<vmem>>, vector<1x16x64xf32>,
    return
  }
  func.func @transform_0(%arg0: i32, %arg1: i32) -> (i32, i32, i32) {
    %c0_i32 = arith.constant 0 : i32
    %c0_i32_0 = arith.constant 0 : i32
    %c0_i32_1 = arith.constant 0 : i32
    return %arg0, %c0_i32, %c0_i32_0 : i32, i32, i32
  }
  func.func @transform_1(%arg0: i32, %arg1: i32) -> (i32, i32) {
    %c0_i32 = arith.constant 0 : i32
    %c0_i32_0 = arith.constant 0 : i32
    %c0_i32_1 = arith.constant 0 : i32
    return %c0_i32, %c0_i32_0 : i32, i32
  }
  func.func @transform_2(%arg0: i32, %arg1: i32) -> (i32, i32) {
    %c0_i32 = arith.constant 0 : i32
    %c0_i32_0 = arith.constant 0 : i32
    %c0_i32_1 = arith.constant 0 : i32
    return %c0_i32, %c0_i32_0 : i32, i32
  }
  func.func @transform_3(%arg0: i32, %arg1: i32) -> (i32, i32) {
    %c0_i32 = arith.constant 0 : i32
    %c0_i32_0 = arith.constant 0 : i32
    %c0_i32_1 = arith.constant 0 : i32
    return %c0_i32, %c0_i32_0 : i32, i32
  }
  func.func @transform_4(%arg0: i32, %arg1: i32) -> (i32, i32) {
    %c0_i32 = arith.constant 0 : i32
    %c0_i32_0 = arith.constant 0 : i32
    %c0_i32_1 = arith.constant 0 : i32
    return %c0_i32, %c0_i32_0 : i32, i32
  }
  func.func @transform_5(%arg0: i32, %arg1: i32) -> (i32, i32) {
    %c0_i32 = arith.constant 0 : i32
    %c0_i32_0 = arith.constant 0 : i32
    %c0_i32_1 = arith.constant 0 : i32
    return %c0_i32, %c0_i32_0 : i32, i32
  }
  func.func @transform_6(%arg0: i32, %arg1: i32) -> (i32, i32, i32) {
    %c0_i32 = arith.constant 0 : i32
    %c0_i32_0 = arith.constant 0 : i32
    return %arg0, %c0_i32, %arg1 : i32, i32, i32
  }
  func.func @transform_7(%arg0: i32, %arg1: i32) -> (i32, i32, i32) {
    %c0_i32 = arith.constant 0 : i32
    %c0_i32_0 = arith.constant 0 : i32
    return %arg0, %arg1, %c0_i32 : i32, i32, i32
  }
}

</mosaic_0001>

<bundles_post_ra>
// kernel: tpu_custom_call.1
= control target key start
LH: loop header
LB: loop body
LE: loop exit
PB: predicated region body
PF: predicated region fallthrough
CT: control target
= control target key end

     0   :  { %13 = vsyncpa [#allocation6], 0  ;;  %s1934_s0 = inlined_call_operand.hbm [shape: f32[2,16,64], index: 0, kind: input, shape index: {}]   ;;  %s1935_s1 = inlined_call_operand.vmem [shape: f32[2,16], index: 1, kind: input, shape index: {}]   ;;  %s1936_s2 = inlined_call_operand.vmem [shape: f32[2,1], index: 2, kind: input, shape index: {}]   ;;  %s1937_s3 = inlined_call_operand.vmem [shape: f32[2,16], index: 3, kind: input, shape index: {}]   ;;  %s1938_s4 = inlined_call_operand.vmem [shape: f32[16,16], index: 4, kind: input, shape index: {}]   ;;  %s1939_s5 = inlined_call_operand.vmem [shape: f32[16,1], index: 5, kind: input, shape index: {}]   ;;  %s1940_s6 = inlined_call_operand.hbm [shape: f32[2,16,64], index: 6, kind: output, shape index: {0}]   ;;  %s1941_s7 = inlined_call_operand.hbm [shape: f32[2,64,64], index: 7, kind: output, shape index: {1}]  }
   0x1   :  { %15 = vsyncpa [#allocation6 + $0x1], 0 }
   0x2   :  { %16 = vsyncpa [#allocation7], 0 }
   0x3   :  { %18 = vsyncpa [#allocation7 + $0x1], 0 }
   0x4   :  { %19 = vsyncpa [#allocation10], 0 }
   0x5   :  { %21 = vsyncpa [#allocation10 + $0x1], 0  ;;  %s1604_s24 = smov 0   ;;  %s1606_s25 = smov 0  }
   0x6   :  { %s1608_s26 = smov 0   ;;  %s1610_s27 = smov 0  }
   0x7   :  { %s1612_s28 = smov 0   ;;  %s1614_s29 = smov 0  }
   0x8 LB: > { %s1136_s30 = sadd.s32 4294967295, %s1551_s29   ;;  %s1137_s8 = sadd.s32 4294967294, %s1551_s29   ;;  %s1551_s29 = sphi %s1614_s29, %s27_s29   ;;  %s1547_s28 = sphi %s1612_s28, %s1958_s28   ;;  %s1543_s27 = sphi %s1610_s27, %s1957_s27   ;;  %s1539_s26 = sphi %s1608_s26, %s1956_s26   ;;  %s1535_s25 = sphi %s1606_s25, %s1955_s25   ;;  %s1531_s24 = sphi %s1604_s24, %s1954_s24  }
   0x9   : > { %s39_s9 = sadd.s32 1, %s1547_s28  ;;  %s46_s10 = sadd.s32 1, %s1539_s26 }
   0xa   : > { %p41_p0 = scmp.ge.s32.totalorder %s39_s9, 2  ;;  %p53_p1 = scmp.ne.s32.totalorder %s1539_s26, %s1535_s25 }
   0xb   : > { %p54_p2 = scmp.eq.s32.totalorder %s1551_s29, 0  ;;  %p59_p3 = scmp.ne.s32.totalorder %s1535_s25, %s1531_s24 }
   0xc   : > { %s1960_s9 = smov (%p41_p0, %s39_s9), 0  ;;  %p60_p5 = scmp.eq.s32.totalorder %s1136_s30, 0 }
   0xd   : > { %p1645_p4 = por %p54_p2, %p53_p1  ;;  %s43_s12 = ssub.s32 %s1547_s28, %s1960_s9 }
   0xe   : > { %p190_p6 = scmp.eq.s32.totalorder %s1136_s30, 1  ;;  %p44_p7 = scmp.eq.s32.totalorder %s43_s12, 0 }
   0xf   : > { %p1651_p8 = por %p60_p5, %p59_p3  ;;  %p196_p10 = scmp.eq.s32.totalorder %s1137_s8, 1 }
  0x10   : > { %p1655_p9 = por %p190_p6, %p53_p1  ;;  %p1315_p13 = scmp.lt.s32.totalorder %s1551_s29, 2 }
  0x11   : > { %s1660_s15 = scalar_select %p44_p7, %s1539_s26, %s46_s10  }
  0x12   : > { %s1945_s14 = scalar_select %p1655_p9, 1, 0 }
  0x13   : > { %p1662_p11 = por %p196_p10, %p59_p3  ;;  %s259_s17 = sand.u32 1, %s1539_s26  }
  0x14   : > { %s1140_s18 = sshll.u32 %s259_s17, 4  ;;  %s1178_s19 = sshll.u32 %s1547_s28, 8 }
  0x15   : > { %s1946_s16 = scalar_select %p1662_p11, 1, 0 }
  0x16   : > { %s1673_s22 = scalar_lea.hbm %s1934_s0, %s1178_s19  ;;  %s263_s23 = scalar_lea.vmem [#allocation5], %s1140_s18 }
  0x17   : > { %s270_s30 = sshll.u32 %s263_s23, 4  ;;  %p1679_p0 = pnand %p1315_p13, %p1645_p4  ;;  %s1675_s30 = int_to_ptr.vmem [resolvable:$true] %s270_s30 }
  0x18   : > { %s1684_s10 = scalar_lea.sflag [#allocation6], %s259_s17  ;;  %s1407_s12 = scalar_lea.hbm %s1673_s22, 256 }
  0x19   : > { %p1408_p2 = scmp.ne.s32.totalorder %s1673_s22, %s1407_s12  ;;  %p1409_p3 = pneg %p1679_p0 }
  0x1a   : > { %s1412_s11 = scalar_lea.hbm %s1934_s0, 512  ;;  %p1413_p4 = scmp.lt.u32.totalorder %s1673_s22, %s1934_s0 }
  0x1b   : > { %p1410_p5 = pnand %p1409_p3, %p1408_p2  ;;  %p1414_p7 = scmp.lt.u32.totalorder %s1412_s11, %s1407_s12 }
  0x1c   : > { %p1416_p13 = scmp.lt.u32.totalorder %s1407_s12, %s1673_s22 }
  0x1d   : > { %p1411_p6 = pneg %p1410_p5  ;;  %p1415_p10 = por %p1414_p7, %p1413_p4 }
  0x1f   : > { %p1417_p12 = por %p1416_p13, %p1415_p10 }
  0x21   : > { %p1418_p1 = pnand %p1417_p12, %p1411_p6 }
  0x23   : > { %1421 = shalt.err (!%p1418_p1)
}
  0x24   : > { %s1422_s17 = scalar_lea.vmem %s1675_s30, 256  ;;  %s1553_s23 = smov [#allocation5]  }
  0x25   : > { %p1423_p2 = scmp.ne.s32.totalorder %s1675_s30, %s1422_s17  ;;  %s1427_s18 = sshll.u32 %s1553_s23, 4  ;;  %s1428_s18 = int_to_ptr.vmem [resolvable:$false] %s1427_s18 }
  0x26   : > { %s1429_s19 = scalar_lea.vmem %s1428_s18, 512  ;;  %p1430_p9 = scmp.lt.s32.totalorder %s1675_s30, %s1428_s18 }
  0x27   : > { %p1425_p5 = pnand %p1423_p2, %p1409_p3  ;;  %p1431_p4 = scmp.lt.s32.totalorder %s1429_s19, %s1422_s17 }
  0x29   : > { %p1426_p11 = pneg %p1425_p5  ;;  %p1432_p7 = por %p1431_p4, %p1430_p9 }
  0x2b   : > { %p1433_p10 = pnand %p1432_p7, %p1426_p11 }
  0x2d   : > { %1436 = shalt.err (!%p1433_p10)
}
  0x2e   : > { %s1554_s12 = smov 128   ;;  %s1555_s11 = smov 8  }
  0x2f   : > { %1307 = dma.hbm_to_vmem [thread:$0]  (!%p1679_p0), %s1673_s22, 256, %s1675_s30, %s1684_s10, %s1554_s12, %s1554_s12, %s1555_s11  }
  0x30   : > { %p278_p12 = scmp.lt.s32.totalorder %s1551_s29, 3  ;;  %p1948_p1 = scmp.ge.s32.totalorder %s1551_s29, 1 }
  0x32   : > { %p279_p3 = pnand %p1948_p1, %p278_p12 }
  0x33   : > { %s1716_s20 = sand.u32 (!%p279_p3), 1, %s1535_s25  }
  0x34   : > { %282 = sbr.rel (%p279_p3) target bundleno = 1213 (0x4bd), region = 44  ;;  %s1144_s21 = sshll.u32 (!%p279_p3), %s1716_s20, 4 }
  0x35   : > { %s285_s17 = scalar_lea.sflag (!%p279_p3), [#allocation6], %s1716_s20  ;;  %s288_s23 = scalar_lea.vmem (!%p279_p3), [#allocation5], %s1144_s21 }
  0x3b   : > { %1518 = dma.done.wait (%p1651_p8), %s285_s17, 256  }
  0x3c   : > { %1520 = vsyncadd (%p1651_p8), %s285_s17, 4294967040  ;;  %v1556_v0 = vmov 0.0|0.0   ;;  %vm1557_vm0 = vmmov 0   ;;  %v1558_v1 = vmov 0.0   ;;  %v1559_v2 = vmov 0   ;;  %v329_v3 = vld [vmem:[%s288_s23] sm:$0xff] }
  0x3d   : > { %1264 = vmatprep.subr.bf16.mxu1 %v1556_v0  ;;  %1214 = vmatprep.mubr.msk.f32.mxu1 %vm1557_vm0, %v1558_v1  ;;  %v330_v4 = vld [vmem:[%s288_s23 + $0x8] sm:$0xff]  ;;  %vm338_vm1 = vcmask 130048   ;;  %vm527_vm2 = vcmask 517120   ;;  %vm663_vm3 = vcmask 1041408   ;;  %vm444_vm4 = vcmask 15360   ;;  %s1146_s8 = sshll.u32 %s1716_s20, 6 }
  0x3e   : > { %1373 = vset.pattern.permute.xlu0 %v1559_v2  ;;  %1374 = vset.pattern.permute.xlu1 %v1559_v2  ;;  %v1265_v5 = vpack.c.bf16 %v330_v4, %v329_v3  ;;  %v332_v6 = vld [vmem:[%s1936_s2] sm:$0x3]  ;;  %v530_v16 = vld [vmem:[%s1938_s4 + $0x8] sm:$0xff]  ;;  %vm624_vm5 = vcmask 523264   ;;  %s1793_s10 = scalar_lea.vmem [#allocation9], %s1146_s8  ;;  %s1180_s18 = sshll.u32 %s1543_s27, 10 }
  0x3f   : > { %335 = vperm.xlu0 %1373, %v332_v6   ;;  %v331_v7 = vld [vmem:[%s1935_s1] sm:$0x3]  ;;  %vm1799_vm6 = vmpackc.low %vm624_vm5, %vm624_vm5  ;;  %s1016_s19 = sshll.u32 %s1793_s10, 4  ;;  %s1841_s17 = scalar_lea.hbm %s1941_s7, %s1180_s18  ;;  %s1843_s19 = int_to_ptr.vmem [resolvable:$true] %s1016_s19 }
  0x40   : > { %1266 = vmatpush3.bf16.msra.mxu1 %v1265_v5  ;;  %v453_v8 = vld [vmem:[%s1937_s3] sm:$0x3]  ;;  %s984_s23 = scalar_lea.sflag [#allocation10], %s1716_s20  ;;  %s1437_s22 = scalar_lea.vmem %s1843_s19, 1024 }
  0x41   : > { %1267 = vmatprep.subr.bf16.mxu1 %v1556_v0  ;;  %v529_v15 = vld [vmem:[%s1938_s4] sm:$0xff]  ;;  %p1438_p8 = scmp.ne.s32.totalorder %s1843_s19, %s1437_s22  ;;  %p1951_p9 = scmp.ne.s32.totalorder %s1945_s14, 0 }
  0x42   : > { %v531_v52 = vld [vmem:[%s1939_s5] sm:$0xff]  ;;  %s1560_s30 = smov [#allocation9]  }
  0x43   : > { %1215 = vmatmul.mubr.msk.f32.vlgmr.msra.gmra.mrb[0].mxu1 %vm338_vm1, %v331_v7  ;;  %p1439_p11 = pnand %p1438_p8, %p1951_p9  ;;  %s1441_s13 = sshll.u32 %s1560_s30, 4  ;;  %s1442_s13 = int_to_ptr.vmem [resolvable:$false] %s1441_s13 }
  0x44   : > { %1269 = vmatpush3.bf16.msra.mxu1 %v1265_v5  ;;  %1221 = vmatprep.mubr.msk.f32.mxu1 %vm1557_vm0, %v1558_v1  ;;  %s1443_s8 = scalar_lea.vmem %s1442_s13, 2048  ;;  %p1444_p6 = scmp.lt.s32.totalorder %s1843_s19, %s1442_s13 }
  0x45   : > { %1271 = vmatprep.subr.bf16.mxu1 %v1265_v5  ;;  %p1440_p0 = pneg %p1439_p11  ;;  %p1445_p13 = scmp.lt.s32.totalorder %s1443_s8, %s1437_s22 }
  0x47   : > { %1222 = vmatmul.mubr.msk.f32.vlgmr.msra.gmra.mrb[2].mxu1 %vm338_vm1, %v453_v8  ;;  %p1446_p2 = por %p1445_p13, %p1444_p6 }
  0x48   : > { %1273 = vmatpush3.bf16.msra.mxu1 %v1265_v5  ;;  %1228 = vmatprep.mubr.msk.f32.mxu1 %vm338_vm1, %v529_v15 }
  0x49   : > { %p1447_p5 = pnand %p1446_p2, %p1440_p0 }
  0x4b   : > { %1229 = vmatmul.mubr.msk.f32.vlgmr.msra.gmra.mrb[4].mxu1 %vm338_vm1, %v530_v16 }
  0xbe   : > { %v336_v9 = vpop.permute.xlu0 %335 }
 0x116   : > { %v408_v10 = vpop.f32.mrb[0].mxu1 }
 0x117   : > { %v409_v11 = vadd.f32 %v408_v10, %v336_v9  ;;  %v1216_v12 = vpop.f32.mrb[1].mxu1 }
 0x119   : > { %412 = vxpose.xlu0.b32.start.end [1/1] (short) (narrow) %v409_v11, 64 }
 0x11a   : > { %v523_v13 = vpop.f32.mrb[2].mxu1 }
 0x11b   : > { %528 = vst.msk [vmem:[#allocation3] sm:$0x3] %vm527_vm2, %v523_v13  ;;  %v1223_v14 = vpop.f32.mrb[3].mxu1 }
 0x11e   : > { %v1763_v34 = vpop.f32.mrb[4].mxu1 }
 0x11f   : > { %v1765_v35 = vpop.f32.mrb[5].mxu1 }
 0x122   : > { %v637_v17 = vld [vmem:[#allocation3] sm:$0x3] }
 0x123   : > { %1231 = vmatprep.subr.msk.mxu1 %vm663_vm3, %v637_v17 }
 0x124   : > { %1232 = vmatpush3.msk.msra.mxu1 %vm663_vm3, %v637_v17 }
 0x199   : > { %v428_v18 = vpop.trf.xlu0 }
 0x19a   : > { %445 = vst.msk [vmem:[#allocation2] sm:$0xff] %vm444_vm4, %v428_v18 }
 0x19d   : > { %v429_v19 = vpop.trf.xlu0 }
 0x19e   : > { %446 = vst.msk [vmem:[#allocation2 + $0x8] sm:$0xff] %vm444_vm4, %v429_v19 }
 0x1a1   : > { %v430_v20 = vpop.trf.xlu0  ;;  %v629_v21 = vld [vmem:[#allocation2] sm:$0xff] }
 0x1a2   : > { %447 = vst.msk [vmem:[#allocation2 + $0x10] sm:$0xff] %vm444_vm4, %v430_v20  ;;  %1233 = vmatprep.mubr.msk.f32.mxu1 %vm444_vm4, %v629_v21 }
 0x1a5   : > { %v431_v22 = vpop.trf.xlu0  ;;  %v630_v23 = vld [vmem:[#allocation2 + $0x8] sm:$0xff] }
 0x1a6   : > { %448 = vst.msk [vmem:[#allocation2 + $0x18] sm:$0xff] %vm444_vm4, %v431_v22  ;;  %1234 = vmatmul.mubr.msk.f32.vlgmr.msra.gmra.mrb[6].mxu1 %vm444_vm4, %v630_v23 }
 0x1a9   : > { %v432_v24 = vpop.trf.xlu0  ;;  %v631_v25 = vld [vmem:[#allocation2 + $0x10] sm:$0xff] }
 0x1aa   : > { %449 = vst.msk [vmem:[#allocation2 + $0x20] sm:$0xff] %vm444_vm4, %v432_v24  ;;  %1236 = vmatprep.mubr.msk.f32.mxu1 %vm444_vm4, %v631_v25 }
 0x1ad   : > { %v433_v26 = vpop.trf.xlu0  ;;  %v632_v27 = vld [vmem:[#allocation2 + $0x18] sm:$0xff] }
 0x1ae   : > { %450 = vst.msk [vmem:[#allocation2 + $0x28] sm:$0xff] %vm444_vm4, %v433_v26  ;;  %1237 = vmatmul.mubr.msk.f32.gmra.mrb[8].mxu1 %vm444_vm4, %v632_v27 }
 0x1b1   : > { %v434_v28 = vpop.trf.xlu0  ;;  %v633_v29 = vld [vmem:[#allocation2 + $0x20] sm:$0xff] }
 0x1b2   : > { %451 = vst.msk [vmem:[#allocation2 + $0x30] sm:$0xff] %vm444_vm4, %v434_v28  ;;  %1239 = vmatprep.mubr.msk.f32.mxu1 %vm444_vm4, %v633_v29 }
 0x1b5   : > { %v435_v30 = vpop.trf.xlu0  ;;  %v634_v31 = vld [vmem:[#allocation2 + $0x28] sm:$0xff] }
 0x1b6   : > { %452 = vst.msk [vmem:[#allocation2 + $0x38] sm:$0xff] %vm444_vm4, %v435_v30  ;;  %1240 = vmatmul.mubr.msk.f32.gmra.mrb[10].mxu1 %vm444_vm4, %v634_v31 }
 0x1b9   : > { %v635_v32 = vld [vmem:[#allocation2 + $0x30] sm:$0xff] }
 0x1ba   : > { %1242 = vmatprep.mubr.msk.f32.mxu1 %vm444_vm4, %v635_v32  ;;  %v532_v32 = vld [vmem:[%s1939_s5 + $0x8] sm:$0xff] }
 0x1bd   : > { %v636_v33 = vld [vmem:[#allocation2 + $0x38] sm:$0xff] }
 0x1be   : > { %1243 = vmatmul.mubr.msk.f32.gmra.mrb[12].mxu1 %vm444_vm4, %v636_v33 }
 0x279   : > { %v1235_v36 = vpop.f32.mrb[6].mxu1 }
 0x27a   : > { %v733_v37 = vpop.f32.mrb[7].mxu1  ;;  %v776_v38 = vsel %vm624_vm5, %v1235_v36, -inf }
 0x27b   : > { %777 = vmax.xlane.f32.xlu1 %v776_v38  ;;  %v773_v39 = vsel %vm624_vm5, %v733_v37, -inf }
 0x27f   : > { %774 = vmax.xlane.f32.xlu1 %v773_v39 }
 0x281   : > { %v1238_v40 = vpop.f32.mrb[8].mxu1 }
 0x282   : > { %v743_v41 = vpop.f32.mrb[9].mxu1  ;;  %v782_v42 = vsel %vm624_vm5, %v1238_v40, -inf }
 0x283   : > { %783 = vmax.xlane.f32.xlu1 %v782_v42  ;;  %v779_v43 = vsel %vm624_vm5, %v743_v41, -inf }
 0x287   : > { %780 = vmax.xlane.f32.xlu1 %v779_v43 }
 0x289   : > { %v1241_v44 = vpop.f32.mrb[10].mxu1 }
 0x28a   : > { %v753_v45 = vpop.f32.mrb[11].mxu1  ;;  %v788_v46 = vsel %vm624_vm5, %v1241_v44, -inf }
 0x28b   : > { %789 = vmax.xlane.f32.xlu1 %v788_v46  ;;  %v785_v47 = vsel %vm624_vm5, %v753_v45, -inf }
 0x28f   : > { %786 = vmax.xlane.f32.xlu1 %v785_v47 }
 0x291   : > { %v1244_v48 = vpop.f32.mrb[12].mxu1 }
 0x292   : > { %v763_v49 = vpop.f32.mrb[13].mxu1  ;;  %v794_v50 = vsel %vm624_vm5, %v1244_v48, -inf }
 0x293   : > { %795 = vmax.xlane.f32.xlu1 %v794_v50  ;;  %v791_v51 = vsel %vm624_vm5, %v763_v49, -inf }
 0x297   : > { %792 = vmax.xlane.f32.xlu1 %v791_v51 }
 0x2a8   : > { %535 = vperm.xlu1 %1374, %v531_v52  }
 0x308   : > { %v778_v53 = vpop.xlane.xlu1 %777 }
 0x309   : > { %v798_v54 = vsub.f32 %v1235_v36, %v778_v53 }
 0x30b   : > { %v807_v55 = vmul.f32 1.442695, %v798_v54 }
 0x30c   : > { %v775_v56 = vpop.xlane.xlu1 %774 }
 0x30d   : > { %1375 = vpow2.f32 %v807_v55  ;;  %v797_v57 = vsub.f32 %v733_v37, %v775_v56 }
 0x30f   : > { %v805_v58 = vmul.f32 1.442695, %v797_v57 }
 0x310   : > { %v784_v59 = vpop.xlane.xlu1 %783 }
 0x311   : > { %1377 = vpow2.f32 %v805_v58  ;;  %v800_v60 = vsub.f32 %v1238_v40, %v784_v59 }
 0x313   : > { %v811_v61 = vmul.f32 1.442695, %v800_v60 }
 0x314   : > { %v781_v62 = vpop.xlane.xlu1 %780 }
 0x315   : > { %1379 = vpow2.f32 %v811_v61  ;;  %v799_v63 = vsub.f32 %v743_v41, %v781_v62 }
 0x317   : > { %v1376_v0 = vpop.eup %1375  ;;  %v809_v1 = vmul.f32 1.442695, %v799_v63 }
 0x318   : > { %v790_v2 = vpop.xlane.xlu1 %789  ;;  %v824_v3 = vsel %vm624_vm5, %v1376_v0, 0.0 }
 0x319   : > { %1381 = vpow2.f32 %v809_v1  ;;  %v802_v4 = vsub.f32 %v1241_v44, %v790_v2  ;;  %825 = vadd.xlane.f32.xlu0 %v824_v3 }
 0x31b   : > { %v1378_v5 = vpop.eup %1377  ;;  %v815_v6 = vmul.f32 1.442695, %v802_v4 }
 0x31c   : > { %v787_v7 = vpop.xlane.xlu1 %786  ;;  %v821_v8 = vsel %vm624_vm5, %v1378_v5, 0.0 }
 0x31d   : > { %1383 = vpow2.f32 %v815_v6  ;;  %v801_v9 = vsub.f32 %v753_v45, %v787_v7  ;;  %822 = vadd.xlane.f32.xlu1 %v821_v8 }
 0x31f   : > { %v1380_v10 = vpop.eup %1379  ;;  %v813_v11 = vmul.f32 1.442695, %v801_v9 }
 0x320   : > { %v796_v12 = vpop.xlane.xlu1 %795  ;;  %v830_v13 = vsel %vm624_vm5, %v1380_v10, 0.0 }
 0x321   : > { %1385 = vpow2.f32 %v813_v11  ;;  %v804_v14 = vsub.f32 %v1244_v48, %v796_v12  ;;  %831 = vadd.xlane.f32.xlu1 %v830_v13 }
 0x323   : > { %v1382_v15 = vpop.eup %1381  ;;  %v819_v16 = vmul.f32 1.442695, %v804_v14 }
 0x324   : > { %v793_v17 = vpop.xlane.xlu1 %792  ;;  %v827_v18 = vsel %vm624_vm5, %v1382_v15, 0.0 }
 0x325   : > { %1387 = vpow2.f32 %v819_v16  ;;  %v803_v19 = vsub.f32 %v763_v49, %v793_v17  ;;  %828 = vadd.xlane.f32.xlu1 %v827_v18 }
 0x327   : > { %v1384_v20 = vpop.eup %1383  ;;  %v817_v21 = vmul.f32 1.442695, %v803_v19 }
 0x328   : > { %v536_v22 = vpop.permute.xlu1 %535  ;;  %v836_v23 = vsel %vm624_vm5, %v1384_v20, 0.0 }
 0x329   : > { %1389 = vpow2.f32 %v817_v21  ;;  %v616_v24 = vadd.f32 %v1765_v35, %v536_v22  ;;  %837 = vadd.xlane.f32.xlu1 %v836_v23 }
 0x32b   : > { %v1386_v25 = vpop.eup %1385  ;;  %625 = vst.msk [vmem:[#allocation4] sm:$0xff] %vm624_vm5, %v616_v24 }
 0x32c   : > { %v833_v26 = vsel %vm624_vm5, %v1386_v25, 0.0 }
 0x32d   : > { %834 = vadd.xlane.f32.xlu1 %v833_v26 }
 0x32f   : > { %v1388_v27 = vpop.eup %1387 }
 0x330   : > { %v842_v28 = vsel %vm624_vm5, %v1388_v27, 0.0 }
 0x331   : > { %843 = vadd.xlane.f32.xlu1 %v842_v28 }
 0x332   : > { %v869_v29 = vld [vmem:[#allocation4] sm:$0xff] }
 0x333   : > { %v1390_v30 = vpop.eup %1389  ;;  %1261 = vmatprep.mubr.msk.f32.mxu0 %vm624_vm5, %v869_v29 }
 0x334   : > { %v839_v31 = vsel %vm624_vm5, %v1390_v30, 0.0 }
 0x335   : > { %840 = vadd.xlane.f32.xlu1 %v839_v31 }
 0x346   : > { %540 = vperm.xlu1 %1374, %v532_v32  }
 0x3a6   : > { %v826_v33 = vpop.xlane.xlu0 %825 }
 0x3a7   : > { %1391 = vrcp.f32 %v826_v33 }
 0x3aa   : > { %v823_v35 = vpop.xlane.xlu1 %822 }
 0x3ab   : > { %1393 = vrcp.f32 %v823_v35 }
 0x3ae   : > { %v832_v36 = vpop.xlane.xlu1 %831 }
 0x3af   : > { %1395 = vrcp.f32 %v832_v36 }
 0x3b1   : > { %v1392_v37 = vpop.eup %1391 }
 0x3b2   : > { %v829_v38 = vpop.xlane.xlu1 %828  ;;  %v854_v39 = vmul.f32 %v1392_v37, %v1376_v0 }
 0x3b3   : > { %1397 = vrcp.f32 %v829_v38 }
 0x3b4   : > { %862 = vst.msk [vmem:[%s1793_s10 + $0x8] sm:$0xff] %vm624_vm5, %v854_v39 }
 0x3b5   : > { %v1394_v40 = vpop.eup %1393 }
 0x3b6   : > { %v838_v41 = vpop.xlane.xlu1 %837  ;;  %v853_v42 = vmul.f32 %v1394_v40, %v1378_v5 }
 0x3b7   : > { %1399 = vrcp.f32 %v838_v41 }
 0x3b8   : > { %861 = vst.msk [vmem:[%s1793_s10] sm:$0xff] %vm624_vm5, %v853_v42  ;;  %v1274_v44 = vpack.c.bf16 %v854_v39, %v853_v42 }
 0x3b9   : > { %v1396_v45 = vpop.eup %1395 }
 0x3ba   : > { %1276 = vmatprep.subr.msk.bf16.mxu0 %vm1799_vm6, %v1274_v44  ;;  %v835_v46 = vpop.xlane.xlu1 %834  ;;  %v856_v47 = vmul.f32 %v1396_v45, %v1380_v10 }
 0x3bb   : > { %1401 = vrcp.f32 %v835_v46  ;;  %1279 = vmatpush3.bf16.xpose.msk.msra.mxu0 %vm1799_vm6, %v1274_v44 }
 0x3bc   : > { %864 = vst.msk [vmem:[%s1793_s10 + $0x18] sm:$0xff] %vm624_vm5, %v856_v47 }
 0x3bd   : > { %v1398_v48 = vpop.eup %1397 }
 0x3be   : > { %v844_v49 = vpop.xlane.xlu1 %843  ;;  %v855_v50 = vmul.f32 %v1398_v48, %v1382_v15 }
 0x3bf   : > { %1403 = vrcp.f32 %v844_v49 }
 0x3c0   : > { %863 = vst.msk [vmem:[%s1793_s10 + $0x10] sm:$0xff] %vm624_vm5, %v855_v50  ;;  %v1280_v51 = vpack.c.bf16 %v856_v47, %v855_v50 }
 0x3c1   : > { %v1400_v52 = vpop.eup %1399 }
 0x3c2   : > { %1282 = vmatprep.subr.msk.bf16.mxu0 %vm1799_vm6, %v1280_v51  ;;  %v841_v53 = vpop.xlane.xlu1 %840  ;;  %v858_v54 = vmul.f32 %v1400_v52, %v1384_v20 }
 0x3c3   : > { %1405 = vrcp.f32 %v841_v53  ;;  %1285 = vmatpush3.bf16.xpose.msk.msra.mxu0 %vm1799_vm6, %v1280_v51 }
 0x3c4   : > { %866 = vst.msk [vmem:[%s1793_s10 + $0x28] sm:$0xff] %vm624_vm5, %v858_v54 }
 0x3c5   : > { %v1402_v55 = vpop.eup %1401 }
 0x3c6   : > { %v541_v56 = vpop.permute.xlu1 %540  ;;  %v857_v57 = vmul.f32 %v1402_v55, %v1386_v25 }
 0x3c7   : > { %v621_v58 = vadd.f32 %v1763_v34, %v541_v56 }
 0x3c8   : > { %865 = vst.msk [vmem:[%s1793_s10 + $0x20] sm:$0xff] %vm624_vm5, %v857_v57  ;;  %v1286_v59 = vpack.c.bf16 %v858_v54, %v857_v57 }
 0x3c9   : > { %v1404_v60 = vpop.eup %1403  ;;  %626 = vst.msk [vmem:[#allocation4 + $0x8] sm:$0xff] %vm624_vm5, %v621_v58 }
 0x3ca   : > { %1288 = vmatprep.subr.msk.bf16.mxu0 %vm1799_vm6, %v1286_v59  ;;  %v860_v61 = vmul.f32 %v1404_v60, %v1388_v27 }
 0x3cb   : > { %1291 = vmatpush3.bf16.xpose.msk.msra.mxu0 %vm1799_vm6, %v1286_v59 }
 0x3cc   : > { %868 = vst.msk [vmem:[%s1793_s10 + $0x38] sm:$0xff] %vm624_vm5, %v860_v61 }
 0x3cd   : > { %v1406_v34 = vpop.eup %1405 }
 0x3ce   : > { %v859_v62 = vmul.f32 %v1406_v34, %v1390_v30 }
 0x3d0   : > { %867 = vst.msk [vmem:[%s1793_s10 + $0x30] sm:$0xff] %vm624_vm5, %v859_v62  ;;  %v1292_v63 = vpack.c.bf16 %v860_v61, %v859_v62  ;;  %v870_v0 = vld [vmem:[#allocation4 + $0x8] sm:$0xff] }
 0x3d2   : > { %1294 = vmatprep.subr.msk.bf16.mxu0 %vm1799_vm6, %v1292_v63 }
 0x3d3   : > { %1297 = vmatpush3.bf16.xpose.msk.msra.mxu0 %vm1799_vm6, %v1292_v63 }
 0x3da   : > { %1262 = vmatmul.mubr.msk.f32.vlgmr.msra.gmra.mrb[0].mxu0 %vm624_vm5, %v870_v0 }
 0x3db   : > { %1450 = shalt.err (!%p1447_p5)
}
 0x3dc   : > { %s1451_s10 = scalar_lea.hbm %s1841_s17, 1024  ;;  %s1455_s11 = scalar_lea.hbm %s1941_s7, 2048 }
 0x3dd   : > { %p1452_p4 = scmp.ne.s32.totalorder %s1841_s17, %s1451_s10  ;;  %p1456_p12 = scmp.lt.u32.totalorder %s1841_s17, %s1941_s7 }
 0x3de   : > { %p1457_p1 = scmp.lt.u32.totalorder %s1455_s11, %s1451_s10  ;;  %p1459_p8 = scmp.lt.u32.totalorder %s1451_s10, %s1841_s17 }
 0x3df   : > { %p1453_p7 = pnand %p1452_p4, %p1951_p9 }
 0x3e0   : > { %p1458_p3 = por %p1457_p1, %p1456_p12 }
 0x3e1   : > { %p1454_p10 = pneg %p1453_p7 }
 0x3e2   : > { %p1460_p11 = por %p1459_p8, %p1458_p3 }
 0x3e4   : > { %p1461_p0 = pnand %p1460_p11, %p1454_p10 }
 0x3e6   : > { %1464 = shalt.err (!%p1461_p0)
}
 0x3e7   : > { %s1561_s22 = smov 128   ;;  %s1562_s8 = smov 8  }
 0x3e8   : > { %1301 = dma.vmem_to_hbm [thread:$0]  (%p1951_p9), %s1843_s19, 1024, %s1841_s17, %s984_s23, %s1561_s22, %s1561_s22, %s1562_s8  }
 0x3e9   : > { %s316_s10 = scalar_lea.vmem [#allocation8], %s1144_s21  ;;  %s1179_s12 = sshll.u32 %s1543_s27, 8 }
 0x3ea   : > { %s998_s18 = sshll.u32 %s316_s10, 4  ;;  %s1880_s13 = scalar_lea.hbm %s1940_s6, %s1179_s12  ;;  %s1875_s18 = int_to_ptr.vmem [resolvable:$true] %s998_s18 }
 0x3eb   : > { %s979_s19 = scalar_lea.sflag [#allocation7], %s1716_s20  ;;  %s1465_s21 = scalar_lea.vmem %s1875_s18, 256 }
 0x3ec   : > { %p1466_p6 = scmp.ne.s32.totalorder %s1875_s18, %s1465_s21  ;;  %s1563_s27 = smov [#allocation8]  }
 0x3ed   : > { %s1469_s17 = sshll.u32 %s1563_s27, 4  ;;  %s1470_s17 = int_to_ptr.vmem [resolvable:$false] %s1469_s17 }
 0x3ee   : > { %p1467_p13 = pnand %p1466_p6, %p1951_p9  ;;  %s1471_s23 = scalar_lea.vmem %s1470_s17, 512 }
 0x3ef   : > { %p1472_p5 = scmp.lt.s32.totalorder %s1875_s18, %s1470_s17  ;;  %p1473_p4 = scmp.lt.s32.totalorder %s1471_s23, %s1465_s21 }
 0x3f0   : > { %p1468_p2 = pneg %p1467_p13 }
 0x3f1   : > { %p1474_p7 = por %p1473_p4, %p1472_p5 }
 0x3f3   : > { %p1475_p10 = pnand %p1474_p7, %p1468_p2 }
 0x4ad   : > { %v1263_v1 = vpop.f32.mrb[0].mxu0 }
 0x4ae   : > { %977 = vst.msk [vmem:[%s316_s10 + $0x8] sm:$0xff] %vm624_vm5, %v1263_v1  ;;  %v967_v2 = vpop.f32.mrb[1].mxu0 }
 0x4af   : > { %976 = vst.msk [vmem:[%s316_s10] sm:$0xff] %vm624_vm5, %v967_v2 }
 0x4b0   : > { %1478 = shalt.err (!%p1475_p10)
}
 0x4b1   : > { %s1479_s10 = scalar_lea.hbm %s1880_s13, 256  ;;  %s1483_s30 = scalar_lea.hbm %s1940_s6, 512 }
 0x4b2   : > { %p1480_p12 = scmp.ne.s32.totalorder %s1880_s13, %s1479_s10  ;;  %p1484_p8 = scmp.lt.u32.totalorder %s1880_s13, %s1940_s6 }
 0x4b3   : > { %p1485_p11 = scmp.lt.u32.totalorder %s1483_s30, %s1479_s10  ;;  %p1487_p6 = scmp.lt.u32.totalorder %s1479_s10, %s1880_s13 }
 0x4b4   : > { %p1481_p1 = pnand %p1480_p12, %p1951_p9 }
 0x4b5   : > { %p1486_p0 = por %p1485_p11, %p1484_p8 }
 0x4b6   : > { %p1482_p3 = pneg %p1481_p1 }
 0x4b7   : > { %p1488_p13 = por %p1487_p6, %p1486_p0 }
 0x4b9   : > { %p1489_p2 = pnand %p1488_p13, %p1482_p3 }
 0x4bb   : > { %1492 = shalt.err (!%p1489_p2)
}
 0x4bc   : > { %1300 = dma.vmem_to_hbm [thread:$0]  (%p1951_p9), %s1875_s18, 256, %s1880_s13, %s979_s19, %s1561_s22, %s1561_s22, %s1562_s8  }
 0x4bd PF: > { %s1031_s21 = sand.u32 1, %s1531_s24   ;;  %p1952_p5 = scmp.ne.s32.totalorder %s1946_s16, 0 }
 0x4be   : > { %p1953_p4 = scmp.ge.s32.totalorder %s1551_s29, 2  ;;  %s1032_s23 = scalar_lea.sflag [#allocation7], %s1031_s21 }
 0x4c0   : > { %p1309_p7 = pnand %p1953_p4, %p1952_p5 }
 0x4c2   : > { %1522 = dma.done.wait (!%p1309_p7), %s1032_s23, 256  }
 0x4c3   : > { %1524 = vsyncadd (!%p1309_p7), %s1032_s23, 4294967040  ;;  %s1041_s14 = scalar_lea.sflag [#allocation10], %s1031_s21 }
 0x4c4   : > { %1526 = dma.done.wait (!%p1309_p7), %s1041_s14, 1024  }
 0x4c5   : > { %1528 = vsyncadd (!%p1309_p7), %s1041_s14, 4294966272  ;;  %s27_s29 = sadd.s32 1, %s1551_s29   ;;  %s1954_s24 = smov %s1535_s25 }
 0x4c6   : > { %p24_p10 = scmp.ge.s32.totalorder %s27_s29, 4   ;;  %s1955_s25 = smov %s1539_s26 }
 0x4c7   : > { %s1956_s26 = smov %s1660_s15  ;;  %s1957_s27 = smov %s1547_s28 }
 0x4c8   : > { %s1958_s28 = smov %s1960_s9  ;;  %26 = sbr.rel (!%p24_p10) target bundleno = 8 (0x8), region = 111 }
 0x4cf   :  { %1046 = vsyncpa [#allocation6], 1 }
 0x4d0   :  { %1048 = vsyncpa [#allocation6 + $0x1], 1 }
 0x4d1   :  { %1049 = vsyncpa [#allocation7], 1 }
 0x4d2   :  { %1051 = vsyncpa [#allocation7 + $0x1], 1 }
 0x4d3   :  { %1052 = vsyncpa [#allocation10], 1 }
 0x4d4   :  { %1054 = vsyncpa [#allocation10 + $0x1], 1 }

</bundles_post_ra>
